<compile_context>
chip_gen: v6e
topology: v6e:2x2x1
jax: 0.10.0
libtpu: 0.0.40
codegen_flags: <defaults>
</compile_context>

<pallas_src>
import numpy as np
import jax
import jax.numpy as jnp
from jax import lax
from jax.experimental import pallas as pl
from jax.experimental.pallas import tpu as pltpu


# Flipped to False at runtime if this JAX build rejects pipeline_mode=pl.Buffered(1).
_SINGLE_BUFFER_CONSTS = hasattr(pl, "Buffered")


# ---------------------------------------------------------------------------
# Host-built nearest-x2 upsample matrix (tiny at these spatial sizes).
# ---------------------------------------------------------------------------
def _upsample_matrix(Hc, Wc):
    """U (Hc*Wc, 4*Hc*Wc): nearest-x2 upsample as a right matmul on flat spatial."""
    H, W = 2 * Hc, 2 * Wc
    U = np.zeros((Hc * Wc, H * W), np.float32)
    for h in range(H):
        for w in range(W):
            U[(h // 2) * Wc + (w // 2), h * W + w] = 1.0
    return jnp.asarray(U)


# ---------------------------------------------------------------------------
# Fused per-level kernel: 1x1 lateral conv (+ upsample-add) + 3x3 fpn conv.
# All tensors use channels-on-sublanes / flat-spatial-on-lanes layout (C, H*W).
# ---------------------------------------------------------------------------
def _make_level_kernel(has_coarse, emit_lat, C, H, W, P):
    HW = H * W

    def body(x_ref, lw_ref, lb_ref, fw_ref, fb_ref, coarse_ref, u_ref,
             lat_ref, out_ref, pad_ref, stk_ref):
        # ---- lateral 1x1 conv (+ top-down nearest-x2 upsample-add), f32 acc ---
        lat = jnp.dot(lw_ref[...], x_ref[0],
                      preferred_element_type=jnp.float32) + lb_ref[...]
        if has_coarse:
            lat = lat + jnp.dot(coarse_ref[0], u_ref[...],
                                preferred_element_type=jnp.float32)
        if emit_lat:
            lat_ref[0] = lat.astype(lat_ref.dtype)

        # ---- 3x3 / pad=1 fpn conv ---------------------------------------------
        # Zero-bordered copy of lat in VMEM; the nine taps are just statically
        # shifted (C, HW) window loads from it (no shift matrices, no HBM pad).
        pad_ref[...] = jnp.zeros_like(pad_ref)
        pad_ref[:, P:P + HW] = lat

        # w-boundary lane masks, hoisted out of the 9-tap loop.
        w_col = lax.broadcasted_iota(jnp.int32, (1, HW), 1) % W
        mask_l = w_col >= 1          # valid lanes for taps with dx == -1
        mask_r = w_col <= W - 2      # valid lanes for taps with dx == +1

        for t in range(9):
            dy, dx = t // 3 - 1, t % 3 - 1
            s = dy * W + dx
            win = pad_ref[:, P + s:P + s + HW]      # column shift via window load
            if dx == -1:
                win = jnp.where(mask_l, win, 0.0)
            elif dx == 1:
                win = jnp.where(mask_r, win, 0.0)
            stk_ref[t * C:(t + 1) * C, :] = win

        # One (C, 9C) @ (9C, HW) MXU matmul instead of nine (C, C) @ (C, HW).
        out = jnp.dot(fw_ref[...], stk_ref[...],
                      preferred_element_type=jnp.float32) + fb_ref[...]
        out_ref[0] = out.astype(out_ref.dtype)

    if has_coarse and emit_lat:
        def kernel(x, lw, lb, fw, fb, co, u, lat_o, out_o, pad, stk):
            body(x, lw, lb, fw, fb, co, u, lat_o, out_o, pad, stk)
    elif has_coarse:
        def kernel(x, lw, lb, fw, fb, co, u, out_o, pad, stk):
            body(x, lw, lb, fw, fb, co, u, None, out_o, pad, stk)
    elif emit_lat:
        def kernel(x, lw, lb, fw, fb, lat_o, out_o, pad, stk):
            body(x, lw, lb, fw, fb, None, None, lat_o, out_o, pad, stk)
    else:
        def kernel(x, lw, lb, fw, fb, out_o, pad, stk):
            body(x, lw, lb, fw, fb, None, None, None, out_o, pad, stk)
    return kernel


def _const_spec(shape, single_buffer):
    zeros = (0,) * len(shape)
    if single_buffer:
        # Grid-invariant operand: one VMEM buffer is enough (index_map constant).
        return pl.BlockSpec(shape, lambda n: zeros, pipeline_mode=pl.Buffered(1))
    return pl.BlockSpec(shape, lambda n: zeros)


def _fused_fpn_level(x, lwT, lb, fwC, fb, coarse, up_mat, H, W, emit_lat,
                     single_buffer):
    N, Cin, HW = x.shape
    C = lwT.shape[0]
    assert HW == H * W
    has_coarse = coarse is not None
    # Halo >= W+1, rounded up to a 128-lane multiple so the lat store is aligned.
    P = -(-(W + 1) // 128) * 128

    in_specs = [
        pl.BlockSpec((1, Cin, HW), lambda n: (n, 0, 0)),
        _const_spec((C, Cin), single_buffer),
        _const_spec((C, 1), single_buffer),
        _const_spec((C, 9 * C), single_buffer),
        _const_spec((C, 1), single_buffer),
    ]
    args = [x, lwT, lb, fwC, fb]
    if has_coarse:
        HWc = coarse.shape[2]
        in_specs.append(pl.BlockSpec((1, C, HWc), lambda n: (n, 0, 0)))
        in_specs.append(_const_spec((HWc, HW), single_buffer))
        args += [coarse, up_mat]

    out_block = pl.BlockSpec((1, C, HW), lambda n: (n, 0, 0))
    if emit_lat:
        out_shape = (jax.ShapeDtypeStruct((N, C, HW), jnp.float32),
                     jax.ShapeDtypeStruct((N, C, HW), jnp.float32))
        out_specs = (out_block, out_block)
    else:   # finest level: `lat` has no consumer, do not write it to HBM
        out_shape = jax.ShapeDtypeStruct((N, C, HW), jnp.float32)
        out_specs = out_block

    res = pl.pallas_call(
        _make_level_kernel(has_coarse, emit_lat, C, H, W, P),
        out_shape=out_shape,
        grid=(N,),
        in_specs=in_specs,
        out_specs=out_specs,
        scratch_shapes=[pltpu.VMEM((C, HW + 2 * P), jnp.float32),   # padded lat
                        pltpu.VMEM((9 * C, HW), jnp.float32)],      # shifted taps
        compiler_params=pltpu.CompilerParams(
            dimension_semantics=("parallel",)),
    )(*args)
    if emit_lat:
        return res[0], res[1]
    return None, res


def fused_fpn_level(x, lwT, lb, fwC, fb, coarse, up_mat, H, W, emit_lat):
    """Fused level kernel; falls back to default double-buffered BlockSpecs if
    this JAX build rejects pipeline_mode=pl.Buffered(1) on grid-invariant args."""
    global _SINGLE_BUFFER_CONSTS
    if _SINGLE_BUFFER_CONSTS:
        try:
            return _fused_fpn_level(x, lwT, lb, fwC, fb, coarse, up_mat, H, W,
                                    emit_lat, True)
        except Exception:
            _SINGLE_BUFFER_CONSTS = False
    return _fused_fpn_level(x, lwT, lb, fwC, fb, coarse, up_mat, H, W,
                            emit_lat, False)


# ---------------------------------------------------------------------------
# FPN_Neck module (parameters initialized deterministically in-script)
# ---------------------------------------------------------------------------
class FPNNeckPallas:
    def __init__(self, in_channels, out_channels, start_level, end_level, key):
        self.in_channels = list(in_channels)
        self.out_channels = out_channels
        self.start_level = start_level
        self.end_level = end_level
        self.lateral_w, self.lateral_b = [], []
        self.fpn_w, self.fpn_b = [], []
        for i in range(start_level, end_level):
            key, k1, k2, k3, k4 = jax.random.split(key, 5)
            cin = in_channels[i]
            self.lateral_w.append(
                0.1 * jax.random.normal(k1, (cin, out_channels), jnp.float32))
            self.lateral_b.append(
                0.1 * jax.random.normal(k2, (out_channels,), jnp.float32))
            self.fpn_w.append(
                0.1 * jax.random.normal(k3, (9, out_channels, out_channels),
                                        jnp.float32))
            self.fpn_b.append(
                0.1 * jax.random.normal(k4, (out_channels,), jnp.float32))
        C = out_channels
        # Packed kernel-layout parameters.
        self.lwT = [w.T for w in self.lateral_w]                    # (C, Cin)
        self.lb2 = [b.reshape(C, 1) for b in self.lateral_b]        # (C, 1)
        # fwC[o, t*C + c] = fpn_w[t, c, o]  (tap t = ky*3 + kx)  -> (C, 9C)
        self.fwC = [jnp.transpose(w, (2, 0, 1)).reshape(C, 9 * C)
                    for w in self.fpn_w]
        self.fb2 = [b.reshape(C, 1) for b in self.fpn_b]
        self._up_cache = {}

    def _upsample(self, Hc, Wc):
        if (Hc, Wc) not in self._up_cache:
            self._up_cache[(Hc, Wc)] = _upsample_matrix(Hc, Wc)
        return self._up_cache[(Hc, Wc)]

    def __call__(self, inputs_nchw):
        assert len(inputs_nchw) == len(self.in_channels)
        n_lvl = self.end_level - self.start_level
        C = self.out_channels
        xs, hw = [], []
        for i in range(n_lvl):
            x = inputs_nchw[i + self.start_level]
            N, Cin, H, W = x.shape
            xs.append(x.reshape(N, Cin, H * W))   # free metadata reshape of NCHW
            hw.append((H, W))
        outs = [None] * n_lvl
        lat_coarse = None
        # Top-down: coarsest -> finest so each level adds the fully accumulated
        # coarser lateral inside its own fused kernel.
        # TODO(synk): fuse all levels into one pallas_call (grid over (level, n))
        # so `lat` never round-trips HBM between levels.
        for i in range(n_lvl - 1, -1, -1):
            H, W = hw[i]
            if lat_coarse is not None:
                Hc, Wc = hw[i + 1]
                assert H == 2 * Hc and W == 2 * Wc
                up_mat = self._upsample(Hc, Wc)
            else:
                up_mat = None
            lat, out = fused_fpn_level(
                xs[i], self.lwT[i], self.lb2[i], self.fwC[i], self.fb2[i],
                lat_coarse, up_mat, H, W, emit_lat=(i > 0))
            N = xs[i].shape[0]
            outs[i] = out.reshape(N, C, H, W)     # free reshape -> NCHW
            lat_coarse = lat
        return tuple(outs)


# ---------------------------------------------------------------------------
# Pure-JAX reference (independent lax.conv implementation) for correctness.
# ---------------------------------------------------------------------------
def reference_forward(model, inputs_nchw):
    def conv(x, w_oihw, b, pad):
        y = lax.conv_general_dilated(
            x, w_oihw, (1, 1), [(pad, pad), (pad, pad)],
            dimension_numbers=("NCHW", "OIHW", "NCHW"))
        return y + b.reshape(1, -1, 1, 1)

    laterals = []
    for i in range(len(model.lateral_w)):
        cin = model.in_channels[i + model.start_level]
        w = model.lateral_w[i].T.reshape(model.out_channels, cin, 1, 1)
        laterals.append(conv(inputs_nchw[i + model.start_level], w,
                             model.lateral_b[i], 0))
    for i in range(len(laterals) - 1, 0, -1):
        up = jnp.repeat(jnp.repeat(laterals[i], 2, axis=2), 2, axis=3)
        laterals[i - 1] = laterals[i - 1] + up
    outs = []
    for i in range(len(laterals)):
        w = jnp.transpose(
            model.fpn_w[i].reshape(3, 3, model.out_channels, model.out_channels),
            (3, 2, 0, 1))
        outs.append(conv(laterals[i], w, model.fpn_b[i], 1))
    return tuple(outs)


if __name__ == "__main__":
    in_channels = [4, 8, 16, 32]
    out_channels = 8
    start_level, end_level = 0, 4
    spatial = [16, 8, 4, 2]          # pyramid: each level halves H, W
    batch = 2

    key = jax.random.PRNGKey(0)
    key, *ikeys = jax.random.split(key, 1 + len(in_channels))
    inputs = [
        jax.random.normal(ikeys[i],
                          (batch, in_channels[i], spatial[i], spatial[i]),
                          jnp.float32)
        for i in range(len(in_channels))
    ]

    model = FPNNeckPallas(in_channels, out_channels, start_level, end_level,
                          jax.random.PRNGKey(1))

    outs = model(inputs)
    outs = jax.block_until_ready(outs)

    refs = reference_forward(model, inputs)
    for o, r in zip(outs, refs):
        assert o.shape == r.shape, (o.shape, r.shape)
        assert jnp.allclose(o, r, atol=3e-4, rtol=3e-4), \
            float(jnp.max(jnp.abs(o - r)))

    print("KERNEL_OK")
</pallas_src>

<mosaic_0001>
module attributes {stable_mosaic.version = 11 : i64} {
  func.func @kernel(%arg0: i32, %arg1: memref<1x32x4xf32, #tpu.memory_space<vmem>>, %arg2: memref<8x32xf32, #tpu.memory_space<vmem>>, %arg3: memref<8x1xf32, #tpu.memory_space<vmem>>, %arg4: memref<8x72xf32, #tpu.memory_space<vmem>>, %arg5: memref<8x1xf32, #tpu.memory_space<vmem>>, %arg6: memref<1x8x4xf32, #tpu.memory_space<vmem>>, %arg7: memref<1x8x4xf32, #tpu.memory_space<vmem>>, %arg8: memref<8x260xf32, #tpu.memory_space<vmem>>, %arg9: memref<72x4xf32, #tpu.memory_space<vmem>>) attributes {dimension_semantics = [#tpu.dimension_semantics<parallel>], iteration_bounds = array<i64: 2>, scalar_prefetch = 0 : i64, scratch_operands = 2 : i64, tpu.core_type = #tpu.core_type<tc>, window_params = [{transform_indices = @transform_0, window_bounds = array<i64: 1, 32, 4>}, {pipeline_mode = #tpu.pipeline_mode<synchronous>, transform_indices = @transform_1, window_bounds = array<i64: 8, 32>}, {pipeline_mode = #tpu.pipeline_mode<synchronous>, transform_indices = @transform_2, window_bounds = array<i64: 8, 1>}, {pipeline_mode = #tpu.pipeline_mode<synchronous>, transform_indices = @transform_3, window_bounds = array<i64: 8, 72>}, {pipeline_mode = #tpu.pipeline_mode<synchronous>, transform_indices = @transform_4, window_bounds = array<i64: 8, 1>}, {transform_indices = @transform_5, window_bounds = array<i64: 1, 8, 4>}, {transform_indices = @transform_6, window_bounds = array<i64: 1, 8, 4>}]} {
    %c0 = arith.constant 0 : index
    %c0_0 = arith.constant 0 : index
    %0 = vector.load %arg2[%c0, %c0_0] : memref<8x32xf32, #tpu.memory_space<vmem>>, vector<8x32xf32>
    %c0_1 = arith.constant 0 : index
    %c0_2 = arith.constant 0 : index
    %c0_3 = arith.constant 0 : index
    %1 = vector.load %arg1[%c0_1, %c0_2, %c0_3] : memref<1x32x4xf32, #tpu.memory_space<vmem>>, vector<1x32x4xf32>
    %2 = vector.shape_cast %1 : vector<1x32x4xf32> to vector<32x4xf32>
    %cst = arith.constant dense<0.000000e+00> : vector<8x4xf32>
    %3 = tpu.matmul %0, %2, %cst {dimension_numbers = #tpu.dot_dimension_numbers<[1], [0], [0], [1], [0, 0, 1, 1], [], []>} : vector<8x32xf32>, vector<32x4xf32>, vector<8x4xf32> -> vector<8x4xf32>
    %c0_4 = arith.constant 0 : index
    %c0_5 = arith.constant 0 : index
    %4 = vector.load %arg3[%c0_4, %c0_5] : memref<8x1xf32, #tpu.memory_space<vmem>>, vector<8x1xf32>
    %5 = vector.broadcast %4 : vector<8x1xf32> to vector<8x4xf32>
    %6 = arith.addf %3, %5 : vector<8x4xf32>
    %c0_6 = arith.constant 0 : index
    %c0_7 = arith.constant 0 : index
    %c0_8 = arith.constant 0 : index
    %7 = vector.load %arg6[%c0_6, %c0_7, %c0_8] : memref<1x8x4xf32, #tpu.memory_space<vmem>>, vector<1x8x4xf32>
    %8 = vector.shape_cast %7 : vector<1x8x4xf32> to vector<8x4xf32>
    %9 = vector.shape_cast %6 : vector<8x4xf32> to vector<1x8x4xf32>
    tpu.vector_store %arg6[%c0_6, %c0_7, %c0_8], %9 {strides = array<i32>} : memref<1x8x4xf32, #tpu.memory_space<vmem>>, vector<1x8x4xf32>,
    %cst_9 = arith.constant 0.000000e+00 : f32
    %10 = vector.broadcast %cst_9 : f32 to vector<8x260xf32>
    %c0_10 = arith.constant 0 : index
    %c0_11 = arith.constant 0 : index
    %11 = vector.load %arg8[%c0_10, %c0_11] : memref<8x260xf32, #tpu.memory_space<vmem>>, vector<8x260xf32>
    tpu.vector_store %arg8[%c0_10, %c0_11], %10 {strides = array<i32>} : memref<8x260xf32, #tpu.memory_space<vmem>>, vector<8x260xf32>,
    %c0_12 = arith.constant 0 : index
    %c128 = arith.constant 128 : index
    %12 = vector.load %arg8[%c0_12, %c128] : memref<8x260xf32, #tpu.memory_space<vmem>>, vector<8x4xf32>
    tpu.vector_store %arg8[%c0_12, %c128], %6 {strides = array<i32>} : memref<8x260xf32, #tpu.memory_space<vmem>>, vector<8x4xf32>,
    %13 = tpu.iota {dimensions = array<i32: 1>} : vector<1x4xi32>
    %c2_i32 = arith.constant 2 : i32
    %c0_i32 = arith.constant 0 : i32
    %14 = arith.cmpi eq, %c2_i32, %c0_i32 : i32
    %c1_i32 = arith.constant 1 : i32
    %15 = arith.select %14, %c1_i32, %c2_i32 : i32
    %16 = vector.broadcast %15 : i32 to vector<1x4xi32>
    %17 = arith.remsi %13, %16 : vector<1x4xi32>
    %c0_i32_13 = arith.constant 0 : i32
    %18 = vector.broadcast %c0_i32_13 : i32 to vector<1x4xi32>
    %19 = arith.cmpi ne, %17, %18 : vector<1x4xi32>
    %c0_i32_14 = arith.constant 0 : i32
    %20 = vector.broadcast %c0_i32_14 : i32 to vector<1x4xi32>
    %21 = arith.cmpi slt, %17, %20 : vector<1x4xi32>
    %c0_i32_15 = arith.constant 0 : i32
    %22 = arith.cmpi slt, %15, %c0_i32_15 : i32
    %23 = vector.broadcast %22 : i1 to vector<1x4xi1>
    %24 = vector.broadcast %23 : vector<1x4xi1> to vector<1x4xi1>
    %25 = arith.xori %21, %24 : vector<1x4xi1>
    %26 = arith.andi %25, %19 : vector<1x4xi1>
    %27 = vector.broadcast %15 : i32 to vector<1x4xi32>
    %28 = arith.addi %17, %27 : vector<1x4xi32>
    %29 = arith.select %26, %28, %17 : vector<1x4xi1>, vector<1x4xi32>
    %c1_i32_16 = arith.constant 1 : i32
    %30 = vector.broadcast %c1_i32_16 : i32 to vector<1x4xi32>
    %31 = arith.cmpi sge, %29, %30 : vector<1x4xi32>
    %c0_i32_17 = arith.constant 0 : i32
    %32 = vector.broadcast %c0_i32_17 : i32 to vector<1x4xi32>
    %33 = arith.cmpi sle, %29, %32 : vector<1x4xi32>
    %c0_18 = arith.constant 0 : index
    %c125 = arith.constant 125 : index
    %34 = vector.load %arg8[%c0_18, %c125] : memref<8x260xf32, #tpu.memory_space<vmem>>, vector<8x4xf32>
    %cst_19 = arith.constant 0.000000e+00 : f32
    %35 = vector.shape_cast %31 : vector<1x4xi1> to vector<1x4xi1>
    %36 = vector.broadcast %35 : vector<1x4xi1> to vector<8x4xi1>
    %37 = vector.broadcast %cst_19 : f32 to vector<8x4xf32>
    %38 = arith.select %36, %34, %37 : vector<8x4xi1>, vector<8x4xf32>
    %c0_20 = arith.constant 0 : index
    %c0_21 = arith.constant 0 : index
    %39 = vector.load %arg9[%c0_20, %c0_21] : memref<72x4xf32, #tpu.memory_space<vmem>>, vector<8x4xf32>
    tpu.vector_store %arg9[%c0_20, %c0_21], %38 {strides = array<i32>} : memref<72x4xf32, #tpu.memory_space<vmem>>, vector<8x4xf32>,
    %c0_22 = arith.constant 0 : index
    %c126 = arith.constant 126 : index
    %40 = vector.load %arg8[%c0_22, %c126] : memref<8x260xf32, #tpu.memory_space<vmem>>, vector<8x4xf32>
    %c8 = arith.constant 8 : index
    %c0_23 = arith.constant 0 : index
    %41 = vector.load %arg9[%c8, %c0_23] : memref<72x4xf32, #tpu.memory_space<vmem>>, vector<8x4xf32>
    tpu.vector_store %arg9[%c8, %c0_23], %40 {strides = array<i32>} : memref<72x4xf32, #tpu.memory_space<vmem>>, vector<8x4xf32>,
    %c0_24 = arith.constant 0 : index
    %c127 = arith.constant 127 : index
    %42 = vector.load %arg8[%c0_24, %c127] : memref<8x260xf32, #tpu.memory_space<vmem>>, vector<8x4xf32>
    %cst_25 = arith.constant 0.000000e+00 : f32
    %43 = vector.shape_cast %33 : vector<1x4xi1> to vector<1x4xi1>
    %44 = vector.broadcast %43 : vector<1x4xi1> to vector<8x4xi1>
    %45 = vector.broadcast %cst_25 : f32 to vector<8x4xf32>
    %46 = arith.select %44, %42, %45 : vector<8x4xi1>, vector<8x4xf32>
    %c16 = arith.constant 16 : index
    %c0_26 = arith.constant 0 : index
    %47 = vector.load %arg9[%c16, %c0_26] : memref<72x4xf32, #tpu.memory_space<vmem>>, vector<8x4xf32>
    tpu.vector_store %arg9[%c16, %c0_26], %46 {strides = array<i32>} : memref<72x4xf32, #tpu.memory_space<vmem>>, vector<8x4xf32>,
    %c0_27 = arith.constant 0 : index
    %c127_28 = arith.constant 127 : index
    %48 = vector.load %arg8[%c0_27, %c127_28] : memref<8x260xf32, #tpu.memory_space<vmem>>, vector<8x4xf32>
    %cst_29 = arith.constant 0.000000e+00 : f32
    %49 = vector.shape_cast %31 : vector<1x4xi1> to vector<1x4xi1>
    %50 = vector.broadcast %49 : vector<1x4xi1> to vector<8x4xi1>
    %51 = vector.broadcast %cst_29 : f32 to vector<8x4xf32>
    %52 = arith.select %50, %48, %51 : vector<8x4xi1>, vector<8x4xf32>
    %c24 = arith.constant 24 : index
    %c0_30 = arith.constant 0 : index
    %53 = vector.load %arg9[%c24, %c0_30] : memref<72x4xf32, #tpu.memory_space<vmem>>, vector<8x4xf32>
    tpu.vector_store %arg9[%c24, %c0_30], %52 {strides = array<i32>} : memref<72x4xf32, #tpu.memory_space<vmem>>, vector<8x4xf32>,
    %c0_31 = arith.constant 0 : index
    %c128_32 = arith.constant 128 : index
    %54 = vector.load %arg8[%c0_31, %c128_32] : memref<8x260xf32, #tpu.memory_space<vmem>>, vector<8x4xf32>
    %c32 = arith.constant 32 : index
    %c0_33 = arith.constant 0 : index
    %55 = vector.load %arg9[%c32, %c0_33] : memref<72x4xf32, #tpu.memory_space<vmem>>, vector<8x4xf32>
    tpu.vector_store %arg9[%c32, %c0_33], %54 {strides = array<i32>} : memref<72x4xf32, #tpu.memory_space<vmem>>, vector<8x4xf32>,
    %c0_34 = arith.constant 0 : index
    %c129 = arith.constant 129 : index
    %56 = vector.load %arg8[%c0_34, %c129] : memref<8x260xf32, #tpu.memory_space<vmem>>, vector<8x4xf32>
    %cst_35 = arith.constant 0.000000e+00 : f32
    %57 = vector.shape_cast %33 : vector<1x4xi1> to vector<1x4xi1>
    %58 = vector.broadcast %57 : vector<1x4xi1> to vector<8x4xi1>
    %59 = vector.broadcast %cst_35 : f32 to vector<8x4xf32>
    %60 = arith.select %58, %56, %59 : vector<8x4xi1>, vector<8x4xf32>
    %c40 = arith.constant 40 : index
    %c0_36 = arith.constant 0 : index
    %61 = vector.load %arg9[%c40, %c0_36] : memref<72x4xf32, #tpu.memory_space<vmem>>, vector<8x4xf32>
    tpu.vector_store %arg9[%c40, %c0_36], %60 {strides = array<i32>} : memref<72x4xf32, #tpu.memory_space<vmem>>, vector<8x4xf32>,
    %c0_37 = arith.constant 0 : index
    %c129_38 = arith.constant 129 : index
    %62 = vector.load %arg8[%c0_37, %c129_38] : memref<8x260xf32, #tpu.memory_space<vmem>>, vector<8x4xf32>
    %cst_39 = arith.constant 0.000000e+00 : f32
    %63 = vector.shape_cast %31 : vector<1x4xi1> to vector<1x4xi1>
    %64 = vector.broadcast %63 : vector<1x4xi1> to vector<8x4xi1>
    %65 = vector.broadcast %cst_39 : f32 to vector<8x4xf32>
    %66 = arith.select %64, %62, %65 : vector<8x4xi1>, vector<8x4xf32>
    %c48 = arith.constant 48 : index
    %c0_40 = arith.constant 0 : index
    %67 = vector.load %arg9[%c48, %c0_40] : memref<72x4xf32, #tpu.memory_space<vmem>>, vector<8x4xf32>
    tpu.vector_store %arg9[%c48, %c0_40], %66 {strides = array<i32>} : memref<72x4xf32, #tpu.memory_space<vmem>>, vector<8x4xf32>,
    %c0_41 = arith.constant 0 : index
    %c130 = arith.constant 130 : index
    %68 = vector.load %arg8[%c0_41, %c130] : memref<8x260xf32, #tpu.memory_space<vmem>>, vector<8x4xf32>
    %c56 = arith.constant 56 : index
    %c0_42 = arith.constant 0 : index
    %69 = vector.load %arg9[%c56, %c0_42] : memref<72x4xf32, #tpu.memory_space<vmem>>, vector<8x4xf32>
    tpu.vector_store %arg9[%c56, %c0_42], %68 {strides = array<i32>} : memref<72x4xf32, #tpu.memory_space<vmem>>, vector<8x4xf32>,
    %c0_43 = arith.constant 0 : index
    %c131 = arith.constant 131 : index
    %70 = vector.load %arg8[%c0_43, %c131] : memref<8x260xf32, #tpu.memory_space<vmem>>, vector<8x4xf32>
    %cst_44 = arith.constant 0.000000e+00 : f32
    %71 = vector.shape_cast %33 : vector<1x4xi1> to vector<1x4xi1>
    %72 = vector.broadcast %71 : vector<1x4xi1> to vector<8x4xi1>
    %73 = vector.broadcast %cst_44 : f32 to vector<8x4xf32>
    %74 = arith.select %72, %70, %73 : vector<8x4xi1>, vector<8x4xf32>
    %c64 = arith.constant 64 : index
    %c0_45 = arith.constant 0 : index
    %75 = vector.load %arg9[%c64, %c0_45] : memref<72x4xf32, #tpu.memory_space<vmem>>, vector<8x4xf32>
    tpu.vector_store %arg9[%c64, %c0_45], %74 {strides = array<i32>} : memref<72x4xf32, #tpu.memory_space<vmem>>, vector<8x4xf32>,
    %c0_46 = arith.constant 0 : index
    %c0_47 = arith.constant 0 : index
    %76 = vector.load %arg4[%c0_46, %c0_47] : memref<8x72xf32, #tpu.memory_space<vmem>>, vector<8x72xf32>
    %c0_48 = arith.constant 0 : index
    %c0_49 = arith.constant 0 : index
    %77 = vector.load %arg9[%c0_48, %c0_49] : memref<72x4xf32, #tpu.memory_space<vmem>>, vector<72x4xf32>
    %cst_50 = arith.constant dense<0.000000e+00> : vector<8x4xf32>
    %78 = tpu.matmul %76, %77, %cst_50 {dimension_numbers = #tpu.dot_dimension_numbers<[1], [0], [0], [1], [0, 0, 1, 1], [], []>} : vector<8x72xf32>, vector<72x4xf32>, vector<8x4xf32> -> vector<8x4xf32>
    %c0_51 = arith.constant 0 : index
    %c0_52 = arith.constant 0 : index
    %79 = vector.load %arg5[%c0_51, %c0_52] : memref<8x1xf32, #tpu.memory_space<vmem>>, vector<8x1xf32>
    %80 = vector.broadcast %79 : vector<8x1xf32> to vector<8x4xf32>
    %81 = arith.addf %78, %80 : vector<8x4xf32>
    %c0_53 = arith.constant 0 : index
    %c0_54 = arith.constant 0 : index
    %c0_55 = arith.constant 0 : index
    %82 = vector.load %arg7[%c0_53, %c0_54, %c0_55] : memref<1x8x4xf32, #tpu.memory_space<vmem>>, vector<1x8x4xf32>
    %83 = vector.shape_cast %82 : vector<1x8x4xf32> to vector<8x4xf32>
    %84 = vector.shape_cast %81 : vector<8x4xf32> to vector<1x8x4xf32>
    tpu.vector_store %arg7[%c0_53, %c0_54, %c0_55], %84 {strides = array<i32>} : memref<1x8x4xf32, #tpu.memory_space<vmem>>, vector<1x8x4xf32>,
    return
  }
  func.func @transform_0(%arg0: i32) -> (i32, i32, i32) {
    %c0_i32 = arith.constant 0 : i32
    %c0_i32_0 = arith.constant 0 : i32
    %c0_i32_1 = arith.constant 0 : i32
    return %arg0, %c0_i32, %c0_i32_0 : i32, i32, i32
  }
  func.func @transform_1(%arg0: i32) -> (i32, i32) {
    %c0_i32 = arith.constant 0 : i32
    %c0_i32_0 = arith.constant 0 : i32
    %c0_i32_1 = arith.constant 0 : i32
    return %c0_i32, %c0_i32_0 : i32, i32
  }
  func.func @transform_2(%arg0: i32) -> (i32, i32) {
    %c0_i32 = arith.constant 0 : i32
    %c0_i32_0 = arith.constant 0 : i32
    %c0_i32_1 = arith.constant 0 : i32
    return %c0_i32, %c0_i32_0 : i32, i32
  }
  func.func @transform_3(%arg0: i32) -> (i32, i32) {
    %c0_i32 = arith.constant 0 : i32
    %c0_i32_0 = arith.constant 0 : i32
    %c0_i32_1 = arith.constant 0 : i32
    return %c0_i32, %c0_i32_0 : i32, i32
  }
  func.func @transform_4(%arg0: i32) -> (i32, i32) {
    %c0_i32 = arith.constant 0 : i32
    %c0_i32_0 = arith.constant 0 : i32
    %c0_i32_1 = arith.constant 0 : i32
    return %c0_i32, %c0_i32_0 : i32, i32
  }
  func.func @transform_5(%arg0: i32) -> (i32, i32, i32) {
    %c0_i32 = arith.constant 0 : i32
    %c0_i32_0 = arith.constant 0 : i32
    %c0_i32_1 = arith.constant 0 : i32
    return %arg0, %c0_i32, %c0_i32_0 : i32, i32, i32
  }
  func.func @transform_6(%arg0: i32) -> (i32, i32, i32) {
    %c0_i32 = arith.constant 0 : i32
    %c0_i32_0 = arith.constant 0 : i32
    %c0_i32_1 = arith.constant 0 : i32
    return %arg0, %c0_i32, %c0_i32_0 : i32, i32, i32
  }
}

module attributes {stable_mosaic.version = 11 : i64} {
  func.func @kernel(%arg0: i32, %arg1: memref<1x32x4xf32, #tpu.memory_space<vmem>>, %arg2: memref<8x32xf32, #tpu.memory_space<vmem>>, %arg3: memref<8x1xf32, #tpu.memory_space<vmem>>, %arg4: memref<8x72xf32, #tpu.memory_space<vmem>>, %arg5: memref<8x1xf32, #tpu.memory_space<vmem>>, %arg6: memref<1x8x4xf32, #tpu.memory_space<vmem>>, %arg7: memref<1x8x4xf32, #tpu.memory_space<vmem>>, %arg8: memref<8x260xf32, #tpu.memory_space<vmem>>, %arg9: memref<72x4xf32, #tpu.memory_space<vmem>>) attributes {dimension_semantics = [#tpu.dimension_semantics<parallel>], iteration_bounds = array<i64: 2>, scalar_prefetch = 0 : i64, scratch_operands = 2 : i64, tpu.core_type = #tpu.core_type<tc>, window_params = [{transform_indices = @transform_0, window_bounds = array<i64: 1, 32, 4>}, {pipeline_mode = #tpu.pipeline_mode<synchronous>, transform_indices = @transform_1, window_bounds = array<i64: 8, 32>}, {pipeline_mode = #tpu.pipeline_mode<synchronous>, transform_indices = @transform_2, window_bounds = array<i64: 8, 1>}, {pipeline_mode = #tpu.pipeline_mode<synchronous>, transform_indices = @transform_3, window_bounds = array<i64: 8, 72>}, {pipeline_mode = #tpu.pipeline_mode<synchronous>, transform_indices = @transform_4, window_bounds = array<i64: 8, 1>}, {transform_indices = @transform_5, window_bounds = array<i64: 1, 8, 4>}, {transform_indices = @transform_6, window_bounds = array<i64: 1, 8, 4>}]} {
    %c0 = arith.constant 0 : index
    %c0_0 = arith.constant 0 : index
    %0 = vector.load %arg2[%c0, %c0_0] : memref<8x32xf32, #tpu.memory_space<vmem>>, vector<8x32xf32>
    %c0_1 = arith.constant 0 : index
    %c0_2 = arith.constant 0 : index
    %c0_3 = arith.constant 0 : index
    %1 = vector.load %arg1[%c0_1, %c0_2, %c0_3] : memref<1x32x4xf32, #tpu.memory_space<vmem>>, vector<1x32x4xf32>
    %2 = vector.shape_cast %1 : vector<1x32x4xf32> to vector<32x4xf32>
    %cst = arith.constant dense<0.000000e+00> : vector<8x4xf32>
    %3 = tpu.matmul %0, %2, %cst {dimension_numbers = #tpu.dot_dimension_numbers<[1], [0], [0], [1], [0, 0, 1, 1], [], []>} : vector<8x32xf32>, vector<32x4xf32>, vector<8x4xf32> -> vector<8x4xf32>
    %c0_4 = arith.constant 0 : index
    %c0_5 = arith.constant 0 : index
    %4 = vector.load %arg3[%c0_4, %c0_5] : memref<8x1xf32, #tpu.memory_space<vmem>>, vector<8x1xf32>
    %5 = vector.broadcast %4 : vector<8x1xf32> to vector<8x4xf32>
    %6 = arith.addf %3, %5 : vector<8x4xf32>
    %c0_6 = arith.constant 0 : index
    %c0_7 = arith.constant 0 : index
    %c0_8 = arith.constant 0 : index
    %7 = vector.load %arg6[%c0_6, %c0_7, %c0_8] : memref<1x8x4xf32, #tpu.memory_space<vmem>>, vector<1x8x4xf32>
    %8 = vector.shape_cast %7 : vector<1x8x4xf32> to vector<8x4xf32>
    %9 = vector.shape_cast %6 : vector<8x4xf32> to vector<1x8x4xf32>
    tpu.vector_store %arg6[%c0_6, %c0_7, %c0_8], %9 {strides = array<i32>} : memref<1x8x4xf32, #tpu.memory_space<vmem>>, vector<1x8x4xf32>,
    %cst_9 = arith.constant 0.000000e+00 : f32
    %10 = vector.broadcast %cst_9 : f32 to vector<8x260xf32>
    %c0_10 = arith.constant 0 : index
    %c0_11 = arith.constant 0 : index
    %11 = vector.load %arg8[%c0_10, %c0_11] : memref<8x260xf32, #tpu.memory_space<vmem>>, vector<8x260xf32>
    tpu.vector_store %arg8[%c0_10, %c0_11], %10 {strides = array<i32>} : memref<8x260xf32, #tpu.memory_space<vmem>>, vector<8x260xf32>,
    %c0_12 = arith.constant 0 : index
    %c128 = arith.constant 128 : index
    %12 = vector.load %arg8[%c0_12, %c128] : memref<8x260xf32, #tpu.memory_space<vmem>>, vector<8x4xf32>
    tpu.vector_store %arg8[%c0_12, %c128], %6 {strides = array<i32>} : memref<8x260xf32, #tpu.memory_space<vmem>>, vector<8x4xf32>,
    %13 = tpu.iota {dimensions = array<i32: 1>} : vector<1x4xi32>
    %c2_i32 = arith.constant 2 : i32
    %c0_i32 = arith.constant 0 : i32
    %14 = arith.cmpi eq, %c2_i32, %c0_i32 : i32
    %c1_i32 = arith.constant 1 : i32
    %15 = arith.select %14, %c1_i32, %c2_i32 : i32
    %16 = vector.broadcast %15 : i32 to vector<1x4xi32>
    %17 = arith.remsi %13, %16 : vector<1x4xi32>
    %c0_i32_13 = arith.constant 0 : i32
    %18 = vector.broadcast %c0_i32_13 : i32 to vector<1x4xi32>
    %19 = arith.cmpi ne, %17, %18 : vector<1x4xi32>
    %c0_i32_14 = arith.constant 0 : i32
    %20 = vector.broadcast %c0_i32_14 : i32 to vector<1x4xi32>
    %21 = arith.cmpi slt, %17, %20 : vector<1x4xi32>
    %c0_i32_15 = arith.constant 0 : i32
    %22 = arith.cmpi slt, %15, %c0_i32_15 : i32
    %23 = vector.broadcast %22 : i1 to vector<1x4xi1>
    %24 = vector.broadcast %23 : vector<1x4xi1> to vector<1x4xi1>
    %25 = arith.xori %21, %24 : vector<1x4xi1>
    %26 = arith.andi %25, %19 : vector<1x4xi1>
    %27 = vector.broadcast %15 : i32 to vector<1x4xi32>
    %28 = arith.addi %17, %27 : vector<1x4xi32>
    %29 = arith.select %26, %28, %17 : vector<1x4xi1>, vector<1x4xi32>
    %c1_i32_16 = arith.constant 1 : i32
    %30 = vector.broadcast %c1_i32_16 : i32 to vector<1x4xi32>
    %31 = arith.cmpi sge, %29, %30 : vector<1x4xi32>
    %c0_i32_17 = arith.constant 0 : i32
    %32 = vector.broadcast %c0_i32_17 : i32 to vector<1x4xi32>
    %33 = arith.cmpi sle, %29, %32 : vector<1x4xi32>
    %c0_18 = arith.constant 0 : index
    %c125 = arith.constant 125 : index
    %34 = vector.load %arg8[%c0_18, %c125] : memref<8x260xf32, #tpu.memory_space<vmem>>, vector<8x4xf32>
    %cst_19 = arith.constant 0.000000e+00 : f32
    %35 = vector.shape_cast %31 : vector<1x4xi1> to vector<1x4xi1>
    %36 = vector.broadcast %35 : vector<1x4xi1> to vector<8x4xi1>
    %37 = vector.broadcast %cst_19 : f32 to vector<8x4xf32>
    %38 = arith.select %36, %34, %37 : vector<8x4xi1>, vector<8x4xf32>
    %c0_20 = arith.constant 0 : index
    %c0_21 = arith.constant 0 : index
    %39 = vector.load %arg9[%c0_20, %c0_21] : memref<72x4xf32, #tpu.memory_space<vmem>>, vector<8x4xf32>
    tpu.vector_store %arg9[%c0_20, %c0_21], %38 {strides = array<i32>} : memref<72x4xf32, #tpu.memory_space<vmem>>, vector<8x4xf32>,
    %c0_22 = arith.constant 0 : index
    %c126 = arith.constant 126 : index
    %40 = vector.load %arg8[%c0_22, %c126] : memref<8x260xf32, #tpu.memory_space<vmem>>, vector<8x4xf32>
    %c8 = arith.constant 8 : index
    %c0_23 = arith.constant 0 : index
    %41 = vector.load %arg9[%c8, %c0_23] : memref<72x4xf32, #tpu.memory_space<vmem>>, vector<8x4xf32>
    tpu.vector_store %arg9[%c8, %c0_23], %40 {strides = array<i32>} : memref<72x4xf32, #tpu.memory_space<vmem>>, vector<8x4xf32>,
    %c0_24 = arith.constant 0 : index
    %c127 = arith.constant 127 : index
    %42 = vector.load %arg8[%c0_24, %c127] : memref<8x260xf32, #tpu.memory_space<vmem>>, vector<8x4xf32>
    %cst_25 = arith.constant 0.000000e+00 : f32
    %43 = vector.shape_cast %33 : vector<1x4xi1> to vector<1x4xi1>
    %44 = vector.broadcast %43 : vector<1x4xi1> to vector<8x4xi1>
    %45 = vector.broadcast %cst_25 : f32 to vector<8x4xf32>
    %46 = arith.select %44, %42, %45 : vector<8x4xi1>, vector<8x4xf32>
    %c16 = arith.constant 16 : index
    %c0_26 = arith.constant 0 : index
    %47 = vector.load %arg9[%c16, %c0_26] : memref<72x4xf32, #tpu.memory_space<vmem>>, vector<8x4xf32>
    tpu.vector_store %arg9[%c16, %c0_26], %46 {strides = array<i32>} : memref<72x4xf32, #tpu.memory_space<vmem>>, vector<8x4xf32>,
    %c0_27 = arith.constant 0 : index
    %c127_28 = arith.constant 127 : index
    %48 = vector.load %arg8[%c0_27, %c127_28] : memref<8x260xf32, #tpu.memory_space<vmem>>, vector<8x4xf32>
    %cst_29 = arith.constant 0.000000e+00 : f32
    %49 = vector.shape_cast %31 : vector<1x4xi1> to vector<1x4xi1>
    %50 = vector.broadcast %49 : vector<1x4xi1> to vector<8x4xi1>
    %51 = vector.broadcast %cst_29 : f32 to vector<8x4xf32>
    %52 = arith.select %50, %48, %51 : vector<8x4xi1>, vector<8x4xf32>
    %c24 = arith.constant 24 : index
    %c0_30 = arith.constant 0 : index
    %53 = vector.load %arg9[%c24, %c0_30] : memref<72x4xf32, #tpu.memory_space<vmem>>, vector<8x4xf32>
    tpu.vector_store %arg9[%c24, %c0_30], %52 {strides = array<i32>} : memref<72x4xf32, #tpu.memory_space<vmem>>, vector<8x4xf32>,
    %c0_31 = arith.constant 0 : index
    %c128_32 = arith.constant 128 : index
    %54 = vector.load %arg8[%c0_31, %c128_32] : memref<8x260xf32, #tpu.memory_space<vmem>>, vector<8x4xf32>
    %c32 = arith.constant 32 : index
    %c0_33 = arith.constant 0 : index
    %55 = vector.load %arg9[%c32, %c0_33] : memref<72x4xf32, #tpu.memory_space<vmem>>, vector<8x4xf32>
    tpu.vector_store %arg9[%c32, %c0_33], %54 {strides = array<i32>} : memref<72x4xf32, #tpu.memory_space<vmem>>, vector<8x4xf32>,
    %c0_34 = arith.constant 0 : index
    %c129 = arith.constant 129 : index
    %56 = vector.load %arg8[%c0_34, %c129] : memref<8x260xf32, #tpu.memory_space<vmem>>, vector<8x4xf32>
    %cst_35 = arith.constant 0.000000e+00 : f32
    %57 = vector.shape_cast %33 : vector<1x4xi1> to vector<1x4xi1>
    %58 = vector.broadcast %57 : vector<1x4xi1> to vector<8x4xi1>
    %59 = vector.broadcast %cst_35 : f32 to vector<8x4xf32>
    %60 = arith.select %58, %56, %59 : vector<8x4xi1>, vector<8x4xf32>
    %c40 = arith.constant 40 : index
    %c0_36 = arith.constant 0 : index
    %61 = vector.load %arg9[%c40, %c0_36] : memref<72x4xf32, #tpu.memory_space<vmem>>, vector<8x4xf32>
    tpu.vector_store %arg9[%c40, %c0_36], %60 {strides = array<i32>} : memref<72x4xf32, #tpu.memory_space<vmem>>, vector<8x4xf32>,
    %c0_37 = arith.constant 0 : index
    %c129_38 = arith.constant 129 : index
    %62 = vector.load %arg8[%c0_37, %c129_38] : memref<8x260xf32, #tpu.memory_space<vmem>>, vector<8x4xf32>
    %cst_39 = arith.constant 0.000000e+00 : f32
    %63 = vector.shape_cast %31 : vector<1x4xi1> to vector<1x4xi1>
    %64 = vector.broadcast %63 : vector<1x4xi1> to vector<8x4xi1>
    %65 = vector.broadcast %cst_39 : f32 to vector<8x4xf32>
    %66 = arith.select %64, %62, %65 : vector<8x4xi1>, vector<8x4xf32>
    %c48 = arith.constant 48 : index
    %c0_40 = arith.constant 0 : index
    %67 = vector.load %arg9[%c48, %c0_40] : memref<72x4xf32, #tpu.memory_space<vmem>>, vector<8x4xf32>
    tpu.vector_store %arg9[%c48, %c0_40], %66 {strides = array<i32>} : memref<72x4xf32, #tpu.memory_space<vmem>>, vector<8x4xf32>,
    %c0_41 = arith.constant 0 : index
    %c130 = arith.constant 130 : index
    %68 = vector.load %arg8[%c0_41, %c130] : memref<8x260xf32, #tpu.memory_space<vmem>>, vector<8x4xf32>
    %c56 = arith.constant 56 : index
    %c0_42 = arith.constant 0 : index
    %69 = vector.load %arg9[%c56, %c0_42] : memref<72x4xf32, #tpu.memory_space<vmem>>, vector<8x4xf32>
    tpu.vector_store %arg9[%c56, %c0_42], %68 {strides = array<i32>} : memref<72x4xf32, #tpu.memory_space<vmem>>, vector<8x4xf32>,
    %c0_43 = arith.constant 0 : index
    %c131 = arith.constant 131 : index
    %70 = vector.load %arg8[%c0_43, %c131] : memref<8x260xf32, #tpu.memory_space<vmem>>, vector<8x4xf32>
    %cst_44 = arith.constant 0.000000e+00 : f32
    %71 = vector.shape_cast %33 : vector<1x4xi1> to vector<1x4xi1>
    %72 = vector.broadcast %71 : vector<1x4xi1> to vector<8x4xi1>
    %73 = vector.broadcast %cst_44 : f32 to vector<8x4xf32>
    %74 = arith.select %72, %70, %73 : vector<8x4xi1>, vector<8x4xf32>
    %c64 = arith.constant 64 : index
    %c0_45 = arith.constant 0 : index
    %75 = vector.load %arg9[%c64, %c0_45] : memref<72x4xf32, #tpu.memory_space<vmem>>, vector<8x4xf32>
    tpu.vector_store %arg9[%c64, %c0_45], %74 {strides = array<i32>} : memref<72x4xf32, #tpu.memory_space<vmem>>, vector<8x4xf32>,
    %c0_46 = arith.constant 0 : index
    %c0_47 = arith.constant 0 : index
    %76 = vector.load %arg4[%c0_46, %c0_47] : memref<8x72xf32, #tpu.memory_space<vmem>>, vector<8x72xf32>
    %c0_48 = arith.constant 0 : index
    %c0_49 = arith.constant 0 : index
    %77 = vector.load %arg9[%c0_48, %c0_49] : memref<72x4xf32, #tpu.memory_space<vmem>>, vector<72x4xf32>
    %cst_50 = arith.constant dense<0.000000e+00> : vector<8x4xf32>
    %78 = tpu.matmul %76, %77, %cst_50 {dimension_numbers = #tpu.dot_dimension_numbers<[1], [0], [0], [1], [0, 0, 1, 1], [], []>} : vector<8x72xf32>, vector<72x4xf32>, vector<8x4xf32> -> vector<8x4xf32>
    %c0_51 = arith.constant 0 : index
    %c0_52 = arith.constant 0 : index
    %79 = vector.load %arg5[%c0_51, %c0_52] : memref<8x1xf32, #tpu.memory_space<vmem>>, vector<8x1xf32>
    %80 = vector.broadcast %79 : vector<8x1xf32> to vector<8x4xf32>
    %81 = arith.addf %78, %80 : vector<8x4xf32>
    %c0_53 = arith.constant 0 : index
    %c0_54 = arith.constant 0 : index
    %c0_55 = arith.constant 0 : index
    %82 = vector.load %arg7[%c0_53, %c0_54, %c0_55] : memref<1x8x4xf32, #tpu.memory_space<vmem>>, vector<1x8x4xf32>
    %83 = vector.shape_cast %82 : vector<1x8x4xf32> to vector<8x4xf32>
    %84 = vector.shape_cast %81 : vector<8x4xf32> to vector<1x8x4xf32>
    tpu.vector_store %arg7[%c0_53, %c0_54, %c0_55], %84 {strides = array<i32>} : memref<1x8x4xf32, #tpu.memory_space<vmem>>, vector<1x8x4xf32>,
    return
  }
  func.func @transform_0(%arg0: i32) -> (i32, i32, i32) {
    %c0_i32 = arith.constant 0 : i32
    %c0_i32_0 = arith.constant 0 : i32
    %c0_i32_1 = arith.constant 0 : i32
    return %arg0, %c0_i32, %c0_i32_0 : i32, i32, i32
  }
  func.func @transform_1(%arg0: i32) -> (i32, i32) {
    %c0_i32 = arith.constant 0 : i32
    %c0_i32_0 = arith.constant 0 : i32
    %c0_i32_1 = arith.constant 0 : i32
    return %c0_i32, %c0_i32_0 : i32, i32
  }
  func.func @transform_2(%arg0: i32) -> (i32, i32) {
    %c0_i32 = arith.constant 0 : i32
    %c0_i32_0 = arith.constant 0 : i32
    %c0_i32_1 = arith.constant 0 : i32
    return %c0_i32, %c0_i32_0 : i32, i32
  }
  func.func @transform_3(%arg0: i32) -> (i32, i32) {
    %c0_i32 = arith.constant 0 : i32
    %c0_i32_0 = arith.constant 0 : i32
    %c0_i32_1 = arith.constant 0 : i32
    return %c0_i32, %c0_i32_0 : i32, i32
  }
  func.func @transform_4(%arg0: i32) -> (i32, i32) {
    %c0_i32 = arith.constant 0 : i32
    %c0_i32_0 = arith.constant 0 : i32
    %c0_i32_1 = arith.constant 0 : i32
    return %c0_i32, %c0_i32_0 : i32, i32
  }
  func.func @transform_5(%arg0: i32) -> (i32, i32, i32) {
    %c0_i32 = arith.constant 0 : i32
    %c0_i32_0 = arith.constant 0 : i32
    %c0_i32_1 = arith.constant 0 : i32
    return %arg0, %c0_i32, %c0_i32_0 : i32, i32, i32
  }
  func.func @transform_6(%arg0: i32) -> (i32, i32, i32) {
    %c0_i32 = arith.constant 0 : i32
    %c0_i32_0 = arith.constant 0 : i32
    %c0_i32_1 = arith.constant 0 : i32
    return %arg0, %c0_i32, %c0_i32_0 : i32, i32, i32
  }
}

</mosaic_0001>

<bundles_post_ra>
// kernel: tpu_custom_call.1
= control target key start
LH: loop header
LB: loop body
LE: loop exit
PB: predicated region body
PF: predicated region fallthrough
CT: control target
= control target key end

     0   :  { %s762_s21 = smov 0   ;;  %s853_s0 = inlined_call_operand.vmem [shape: f32[2,32,4], index: 0, kind: input, shape index: {}]   ;;  %s854_s1 = inlined_call_operand.vmem [shape: f32[8,32], index: 1, kind: input, shape index: {}]   ;;  %s855_s2 = inlined_call_operand.vmem [shape: f32[8,1], index: 2, kind: input, shape index: {}]   ;;  %s856_s3 = inlined_call_operand.vmem [shape: f32[8,72], index: 3, kind: input, shape index: {}]   ;;  %s857_s4 = inlined_call_operand.vmem [shape: f32[8,1], index: 4, kind: input, shape index: {}]   ;;  %s858_s5 = inlined_call_operand.vmem [shape: f32[2,8,4], index: 5, kind: output, shape index: {0}]   ;;  %s859_s6 = inlined_call_operand.vmem [shape: f32[2,8,4], index: 6, kind: output, shape index: {1}]  }
   0x1 LB: > { %s626_s22 = sadd.s32 4294967295, %s716_s21   ;;  %p630_p0 = scmp.ge.s32.totalorder %s716_s21, 1  ;;  %s716_s21 = sphi %s762_s21, %s17_s21  }
   0x2   : > { %p215_p1 = scmp.lt.s32.totalorder %s716_s21, 3 }
   0x4   : > { %p216_p2 = pnand %p630_p0, %p215_p1 }
   0x5   : > { %p248_p3 = scmp.lt.s32.totalorder (!%p216_p2), %s626_s22, 1  ;;  %s721_s7 = smov (!%p216_p2), 1  }
   0x6   : > { %219 = sbr.rel (%p216_p2) target bundleno = 563 (0x233), region = 40  ;;  %s722_s12 = smov (!%p216_p2), 125  }
   0x7   : > { %s723_s13 = smov (!%p216_p2), 126   ;;  %s724_s14 = smov (!%p216_p2), 127  }
   0x8   : > { %s725_s15 = smov (!%p216_p2), 2   ;;  %s726_s16 = smov (!%p216_p2), 3  }
   0xb   : > { %v718_v0 = vmov 0.0   ;;  %vm719_vm0 = vmmov 0   ;;  %v266_v1 = vld [vmem:[%s855_s2] sm:$0xff]  ;;  %s865_s22 = smov (!%p248_p3, %s626_s22), 1  ;;  %v720_v2 = vmov 0   ;;  %vm272_vm1 = vcmask 261120  }
   0xc   : > { %655 = vmatprep.subr.mxu0 %v718_v0  ;;  %349 = vst [vmem:[#allocation2 + $0x8] sm:$0xff] %v718_v0  ;;  %663 = vmatprep.mubr.msk.f32.mxu0 %vm719_vm0, %v718_v0  ;;  %s639_s25 = sshll.u32 %s865_s22, 5  ;;  %v261_v7 = vld [vmem:[%s854_s1] sm:$0xff]  ;;  %vm346_vm2 = vcmask 31744   ;;  %s633_s8 = sshll.u32 %s865_s22, 3  ;;  %v352_v14 = vlaneseq  ;;  %vm405_vm5 = vcmask 7168  }
   0xd   : > { %704 = vset.pattern.permute.xlu0 %v720_v2  ;;  %666 = vmatprep.subr.mxu1 %v718_v0  ;;  %s252_s28 = scalar_lea.vmem %s853_s0, %s639_s25  ;;  %s256_s11 = scalar_lea.vmem %s858_s5, %s633_s8  ;;  %v461_v13 = vld [vmem:[%s857_s4] sm:$0xff]  ;;  %vm391_vm6 = vcmask 15360   ;;  %vm378_vm7 = vcmask 23552   ;;  %vm467_vm8 = vcmask 588800  }
   0xe   : > { %269 = vperm.xlu0 %704, %v266_v1   ;;  %684 = vmatprep.mubr.msk.f32.mxu1 %vm719_vm0, %v718_v0  ;;  %v265_v3 = vld [vmem:[%s252_s28 + $0x18] sm:$0xff]  ;;  %v264_v4 = vld [vmem:[%s252_s28 + $0x10] sm:$0xff]  ;;  %v263_v5 = vld [vmem:[%s252_s28 + $0x8] sm:$0xff]  ;;  %v353_v15 = vand.u32 127, %v352_v14  ;;  %s260_s25 = scalar_lea.vmem %s859_s6, %s633_s8 }
   0xf   : > { %656 = vmatpush3.msra.mxu0 %v265_v3  ;;  %v262_v6 = vld [vmem:[%s252_s28] sm:$0xff]  ;;  %706 = vrot.lane.b32.xlu1 %v718_v0, %s721_s7 }
  0x10   : > { %657 = vmatprep.subr.mxu0 %v718_v0  ;;  %v358_v17 = vand.u32 1, %v353_v15  ;;  %v451_v50 = vld [vmem:[%s856_s3] sm:$0xff] }
  0x11   : > { %658 = vmatpush3.msra.mxu0 %v264_v4 }
  0x12   : > { %659 = vmatprep.subr.mxu0 %v718_v0  ;;  %vm805_vm3 = vcmp.le.s32.totalorder %v358_v17, 0  ;;  %vm813_vm4 = vcmp.ge.s32.totalorder %v358_v17, 1 }
  0x13   : > { %660 = vmatpush3.msra.mxu0 %v263_v5 }
  0x14   : > { %661 = vmatprep.subr.mxu0 %v718_v0 }
  0x15   : > { %662 = vmatpush3.msra.mxu0 %v262_v6 }
  0x16   : > { %664 = vmatmul.mubr.msk.f32.vlgmr.msra.gmra.mxu0 %vm272_vm1, %v261_v7 }
  0x81   : > { %v707_v16 = vpop.permute.xlu1 %706 }
  0x82   : > { %v709_v27 = vunpack.i.h.bf16 %v707_v16  ;;  %v708_v28 = vunpack.i.l.bf16 %v707_v16 }
  0x89   : > { %v270_v8 = vpop.permute.xlu0 %269 }
  0xd6   : > { %v342_v9 = vpop.f32.mrf.mxu0 }
  0xd7   : > { %v343_v10 = vadd.f32 %v342_v9, %v270_v8 }
  0xd8   : > { %v665_v11 = vpop.f32.mrf.mxu0 }
  0xd9   : > { %347 = vst.msk [vmem:[%s256_s11] sm:$0xff] %vm346_vm2, %v343_v10  ;;  %351 = vst.msk [vmem:[#allocation2 + $0x8] sm:$0xff] %vm346_vm2, %v343_v10 }
  0xe0   : > { %v444_v12 = vld [vmem:[#allocation2 + $0x8] sm:$0xff] }
  0xe1   : > { %446 = vrot.lane.b32.xlu0 %v444_v12, %s722_s12  ;;  %440 = vrot.lane.b32.xlu1 %v444_v12, %s723_s13  ;;  %423 = vst.msk [vmem:[#allocation3 + $0x20] sm:$0xff] %vm346_vm2, %v444_v12 }
  0xe5   : > { %433 = vrot.lane.b32.xlu1 %v444_v12, %s724_s14  ;;  %426 = vrot.lane.b32.xlu0 %v444_v12, %s724_s14 }
  0xe8   : > { %v456_v45 = vld [vmem:[#allocation3 + $0x20] sm:$0xff] }
  0xe9   : > { %416 = vrot.lane.b32.xlu0 %v444_v12, %s721_s7  ;;  %403 = vrot.lane.b32.xlu1 %v444_v12, %s721_s7 }
  0xed   : > { %387 = vrot.lane.b32.xlu0 %v718_v0, %s725_s15  ;;  %389 = vrot.lane.b32.xlu1 %v444_v12, %s725_s15 }
  0xf1   : > { %374 = vrot.lane.b32.xlu0 %v718_v0, %s726_s16  ;;  %376 = vrot.lane.b32.xlu1 %v444_v12, %s726_s16 }
  0xf5   : > { %464 = vperm.xlu0 %704, %v461_v13  }
 0x153   : > { %v447_v19 = vpop.permute.xlu0 %446  ;;  %v441_v20 = vpop.permute.xlu1 %440 }
 0x154   : > { %v449_v21 = vsel %vm805_vm3, %v447_v19, 0.0  ;;  %443 = vst.msk [vmem:[#allocation3 + $0x38] sm:$0xff] %vm346_vm2, %v441_v20 }
 0x155   : > { %450 = vst.msk [vmem:[#allocation3 + $0x40] sm:$0xff] %vm346_vm2, %v449_v21 }
 0x157   : > { %v434_v23 = vpop.permute.xlu1 %433  ;;  %v427_v24 = vpop.permute.xlu0 %426 }
 0x158   : > { %v436_v25 = vsel %vm813_vm4, %v434_v23, 0.0  ;;  %v429_v26 = vsel %vm805_vm3, %v427_v24, 0.0 }
 0x159   : > { %437 = vst.msk [vmem:[#allocation3 + $0x30] sm:$0xff] %vm346_vm2, %v436_v25  ;;  %430 = vst.msk [vmem:[#allocation3 + $0x28] sm:$0xff] %vm346_vm2, %v429_v26 }
 0x15b   : > { %v417_v29 = vpop.permute.xlu0 %416  ;;  %v404_v30 = vpop.permute.xlu1 %403  ;;  %v459_v36 = vld [vmem:[#allocation3 + $0x38] sm:$0xff] }
 0x15c   : > { %v418_v31 = vsel %vm405_vm5, %v708_v28, %v417_v29  ;;  %v406_v32 = vsel %vm405_vm5, %v709_v27, %v404_v30  ;;  %v460_v33 = vld [vmem:[#allocation3 + $0x40] sm:$0xff] }
 0x15d   : > { %v420_v34 = vsel %vm813_vm4, %v418_v31, 0.0  ;;  %v408_v35 = vsel %vm805_vm3, %v406_v32, 0.0  ;;  %667 = vmatpush3.msra.mxu1 %v460_v33 }
 0x15e   : > { %421 = vst.msk [vmem:[#allocation3 + $0x18] sm:$0xff] %vm346_vm2, %v420_v34  ;;  %409 = vst.msk [vmem:[#allocation3 + $0x10] sm:$0xff] %vm346_vm2, %v408_v35  ;;  %668 = vmatprep.subr.mxu1 %v718_v0 }
 0x15f   : > { %669 = vmatpush3.msra.mxu1 %v459_v36  ;;  %v388_v37 = vpop.permute.xlu0 %387  ;;  %v390_v38 = vpop.permute.xlu1 %389 }
 0x160   : > { %v392_v39 = vsel %vm391_vm6, %v388_v37, %v390_v38  ;;  %670 = vmatprep.subr.mxu1 %v718_v0  ;;  %v458_v40 = vld [vmem:[#allocation3 + $0x30] sm:$0xff]  ;;  %v457_v41 = vld [vmem:[#allocation3 + $0x28] sm:$0xff] }
 0x161   : > { %394 = vst.msk [vmem:[#allocation3 + $0x8] sm:$0xff] %vm346_vm2, %v392_v39  ;;  %671 = vmatpush3.msra.mxu1 %v458_v40 }
 0x162   : > { %672 = vmatprep.subr.mxu1 %v718_v0 }
 0x163   : > { %673 = vmatpush3.msra.mxu1 %v457_v41  ;;  %v375_v42 = vpop.permute.xlu0 %374  ;;  %v377_v43 = vpop.permute.xlu1 %376 }
 0x164   : > { %v379_v44 = vsel %vm378_vm7, %v375_v42, %v377_v43  ;;  %674 = vmatprep.subr.mxu1 %v718_v0 }
 0x165   : > { %v381_v46 = vsel %vm813_vm4, %v379_v44, 0.0  ;;  %675 = vmatpush3.msra.mxu1 %v456_v45  ;;  %v455_v47 = vld [vmem:[#allocation3 + $0x18] sm:$0xff]  ;;  %v454_v48 = vld [vmem:[#allocation3 + $0x10] sm:$0xff] }
 0x166   : > { %382 = vst.msk [vmem:[#allocation3] sm:$0xff] %vm346_vm2, %v381_v46  ;;  %676 = vmatprep.subr.mxu1 %v718_v0 }
 0x167   : > { %677 = vmatpush3.msra.mxu1 %v455_v47 }
 0x168   : > { %678 = vmatprep.subr.mxu1 %v718_v0  ;;  %v453_v49 = vld [vmem:[#allocation3 + $0x8] sm:$0xff] }
 0x169   : > { %679 = vmatpush3.msra.mxu1 %v454_v48 }
 0x16a   : > { %680 = vmatprep.subr.mxu1 %v718_v0 }
 0x16b   : > { %681 = vmatpush3.msra.mxu1 %v453_v49 }
 0x16c   : > { %682 = vmatprep.subr.mxu1 %v718_v0 }
 0x16d   : > { %v452_v51 = vld [vmem:[#allocation3] sm:$0xff] }
 0x16e   : > { %683 = vmatpush3.msra.mxu1 %v452_v51 }
 0x16f   : > { %685 = vmatmul.mubr.msk.f32.vlgmr.msra.gmra.mxu1 %vm467_vm8, %v451_v50 }
 0x170   : > { %v465_v52 = vpop.permute.xlu0 %464 }
 0x22f   : > { %v537_v53 = vpop.f32.mrf.mxu1 }
 0x230   : > { %v538_v54 = vadd.f32 %v537_v53, %v465_v52 }
 0x231   : > { %v686_v55 = vpop.f32.mrf.mxu1 }
 0x232   : > { %541 = vst.msk [vmem:[%s260_s25] sm:$0xff] %vm346_vm2, %v538_v54 }
 0x233 PF: > { %s17_s21 = sadd.s32 1, %s716_s21  }
 0x234   : > { %p14_p4 = scmp.ge.s32.totalorder %s17_s21, 4  }
 0x236   :  { %16 = sbr.rel (!%p14_p4) target bundleno = 1 (0x1), region = 82 }

// kernel: tpu_custom_call.1
= control target key start
LH: loop header
LB: loop body
LE: loop exit
PB: predicated region body
PF: predicated region fallthrough
CT: control target
= control target key end

     0   :  { %s762_s21 = smov 0   ;;  %s853_s0 = inlined_call_operand.vmem [shape: f32[2,32,4], index: 0, kind: input, shape index: {}]   ;;  %s854_s1 = inlined_call_operand.vmem [shape: f32[8,32], index: 1, kind: input, shape index: {}]   ;;  %s855_s2 = inlined_call_operand.vmem [shape: f32[8,1], index: 2, kind: input, shape index: {}]   ;;  %s856_s3 = inlined_call_operand.vmem [shape: f32[8,72], index: 3, kind: input, shape index: {}]   ;;  %s857_s4 = inlined_call_operand.vmem [shape: f32[8,1], index: 4, kind: input, shape index: {}]   ;;  %s858_s5 = inlined_call_operand.vmem [shape: f32[2,8,4], index: 5, kind: output, shape index: {0}]   ;;  %s859_s6 = inlined_call_operand.vmem [shape: f32[2,8,4], index: 6, kind: output, shape index: {1}]  }
   0x1 LB: > { %s626_s22 = sadd.s32 4294967295, %s716_s21   ;;  %p630_p0 = scmp.ge.s32.totalorder %s716_s21, 1  ;;  %s716_s21 = sphi %s762_s21, %s17_s21  }
   0x2   : > { %p215_p1 = scmp.lt.s32.totalorder %s716_s21, 3 }
   0x4   : > { %p216_p2 = pnand %p630_p0, %p215_p1 }
   0x5   : > { %p248_p3 = scmp.lt.s32.totalorder (!%p216_p2), %s626_s22, 1  ;;  %s721_s7 = smov (!%p216_p2), 1  }
   0x6   : > { %219 = sbr.rel (%p216_p2) target bundleno = 563 (0x233), region = 40  ;;  %s722_s12 = smov (!%p216_p2), 125  }
   0x7   : > { %s723_s13 = smov (!%p216_p2), 126   ;;  %s724_s14 = smov (!%p216_p2), 127  }
   0x8   : > { %s725_s15 = smov (!%p216_p2), 2   ;;  %s726_s16 = smov (!%p216_p2), 3  }
   0xb   : > { %v718_v0 = vmov 0.0   ;;  %vm719_vm0 = vmmov 0   ;;  %v266_v1 = vld [vmem:[%s855_s2] sm:$0xff]  ;;  %s865_s22 = smov (!%p248_p3, %s626_s22), 1  ;;  %v720_v2 = vmov 0   ;;  %vm272_vm1 = vcmask 261120  }
   0xc   : > { %655 = vmatprep.subr.mxu0 %v718_v0  ;;  %349 = vst [vmem:[#allocation2 + $0x8] sm:$0xff] %v718_v0  ;;  %663 = vmatprep.mubr.msk.f32.mxu0 %vm719_vm0, %v718_v0  ;;  %s639_s25 = sshll.u32 %s865_s22, 5  ;;  %v261_v7 = vld [vmem:[%s854_s1] sm:$0xff]  ;;  %vm346_vm2 = vcmask 31744   ;;  %s633_s8 = sshll.u32 %s865_s22, 3  ;;  %v352_v14 = vlaneseq  ;;  %vm405_vm5 = vcmask 7168  }
   0xd   : > { %704 = vset.pattern.permute.xlu0 %v720_v2  ;;  %666 = vmatprep.subr.mxu1 %v718_v0  ;;  %s252_s28 = scalar_lea.vmem %s853_s0, %s639_s25  ;;  %s256_s11 = scalar_lea.vmem %s858_s5, %s633_s8  ;;  %v461_v13 = vld [vmem:[%s857_s4] sm:$0xff]  ;;  %vm391_vm6 = vcmask 15360   ;;  %vm378_vm7 = vcmask 23552   ;;  %vm467_vm8 = vcmask 588800  }
   0xe   : > { %269 = vperm.xlu0 %704, %v266_v1   ;;  %684 = vmatprep.mubr.msk.f32.mxu1 %vm719_vm0, %v718_v0  ;;  %v265_v3 = vld [vmem:[%s252_s28 + $0x18] sm:$0xff]  ;;  %v264_v4 = vld [vmem:[%s252_s28 + $0x10] sm:$0xff]  ;;  %v263_v5 = vld [vmem:[%s252_s28 + $0x8] sm:$0xff]  ;;  %v353_v15 = vand.u32 127, %v352_v14  ;;  %s260_s25 = scalar_lea.vmem %s859_s6, %s633_s8 }
   0xf   : > { %656 = vmatpush3.msra.mxu0 %v265_v3  ;;  %v262_v6 = vld [vmem:[%s252_s28] sm:$0xff]  ;;  %706 = vrot.lane.b32.xlu1 %v718_v0, %s721_s7 }
  0x10   : > { %657 = vmatprep.subr.mxu0 %v718_v0  ;;  %v358_v17 = vand.u32 1, %v353_v15  ;;  %v451_v50 = vld [vmem:[%s856_s3] sm:$0xff] }
  0x11   : > { %658 = vmatpush3.msra.mxu0 %v264_v4 }
  0x12   : > { %659 = vmatprep.subr.mxu0 %v718_v0  ;;  %vm805_vm3 = vcmp.le.s32.totalorder %v358_v17, 0  ;;  %vm813_vm4 = vcmp.ge.s32.totalorder %v358_v17, 1 }
  0x13   : > { %660 = vmatpush3.msra.mxu0 %v263_v5 }
  0x14   : > { %661 = vmatprep.subr.mxu0 %v718_v0 }
  0x15   : > { %662 = vmatpush3.msra.mxu0 %v262_v6 }
  0x16   : > { %664 = vmatmul.mubr.msk.f32.vlgmr.msra.gmra.mxu0 %vm272_vm1, %v261_v7 }
  0x81   : > { %v707_v16 = vpop.permute.xlu1 %706 }
  0x82   : > { %v709_v27 = vunpack.i.h.bf16 %v707_v16  ;;  %v708_v28 = vunpack.i.l.bf16 %v707_v16 }
  0x89   : > { %v270_v8 = vpop.permute.xlu0 %269 }
  0xd6   : > { %v342_v9 = vpop.f32.mrf.mxu0 }
  0xd7   : > { %v343_v10 = vadd.f32 %v342_v9, %v270_v8 }
  0xd8   : > { %v665_v11 = vpop.f32.mrf.mxu0 }
  0xd9   : > { %347 = vst.msk [vmem:[%s256_s11] sm:$0xff] %vm346_vm2, %v343_v10  ;;  %351 = vst.msk [vmem:[#allocation2 + $0x8] sm:$0xff] %vm346_vm2, %v343_v10 }
  0xe0   : > { %v444_v12 = vld [vmem:[#allocation2 + $0x8] sm:$0xff] }
  0xe1   : > { %446 = vrot.lane.b32.xlu0 %v444_v12, %s722_s12  ;;  %440 = vrot.lane.b32.xlu1 %v444_v12, %s723_s13  ;;  %423 = vst.msk [vmem:[#allocation3 + $0x20] sm:$0xff] %vm346_vm2, %v444_v12 }
  0xe5   : > { %433 = vrot.lane.b32.xlu1 %v444_v12, %s724_s14  ;;  %426 = vrot.lane.b32.xlu0 %v444_v12, %s724_s14 }
  0xe8   : > { %v456_v45 = vld [vmem:[#allocation3 + $0x20] sm:$0xff] }
  0xe9   : > { %416 = vrot.lane.b32.xlu0 %v444_v12, %s721_s7  ;;  %403 = vrot.lane.b32.xlu1 %v444_v12, %s721_s7 }
  0xed   : > { %387 = vrot.lane.b32.xlu0 %v718_v0, %s725_s15  ;;  %389 = vrot.lane.b32.xlu1 %v444_v12, %s725_s15 }
  0xf1   : > { %374 = vrot.lane.b32.xlu0 %v718_v0, %s726_s16  ;;  %376 = vrot.lane.b32.xlu1 %v444_v12, %s726_s16 }
  0xf5   : > { %464 = vperm.xlu0 %704, %v461_v13  }
 0x153   : > { %v447_v19 = vpop.permute.xlu0 %446  ;;  %v441_v20 = vpop.permute.xlu1 %440 }
 0x154   : > { %v449_v21 = vsel %vm805_vm3, %v447_v19, 0.0  ;;  %443 = vst.msk [vmem:[#allocation3 + $0x38] sm:$0xff] %vm346_vm2, %v441_v20 }
 0x155   : > { %450 = vst.msk [vmem:[#allocation3 + $0x40] sm:$0xff] %vm346_vm2, %v449_v21 }
 0x157   : > { %v434_v23 = vpop.permute.xlu1 %433  ;;  %v427_v24 = vpop.permute.xlu0 %426 }
 0x158   : > { %v436_v25 = vsel %vm813_vm4, %v434_v23, 0.0  ;;  %v429_v26 = vsel %vm805_vm3, %v427_v24, 0.0 }
 0x159   : > { %437 = vst.msk [vmem:[#allocation3 + $0x30] sm:$0xff] %vm346_vm2, %v436_v25  ;;  %430 = vst.msk [vmem:[#allocation3 + $0x28] sm:$0xff] %vm346_vm2, %v429_v26 }
 0x15b   : > { %v417_v29 = vpop.permute.xlu0 %416  ;;  %v404_v30 = vpop.permute.xlu1 %403  ;;  %v459_v36 = vld [vmem:[#allocation3 + $0x38] sm:$0xff] }
 0x15c   : > { %v418_v31 = vsel %vm405_vm5, %v708_v28, %v417_v29  ;;  %v406_v32 = vsel %vm405_vm5, %v709_v27, %v404_v30  ;;  %v460_v33 = vld [vmem:[#allocation3 + $0x40] sm:$0xff] }
 0x15d   : > { %v420_v34 = vsel %vm813_vm4, %v418_v31, 0.0  ;;  %v408_v35 = vsel %vm805_vm3, %v406_v32, 0.0  ;;  %667 = vmatpush3.msra.mxu1 %v460_v33 }
 0x15e   : > { %421 = vst.msk [vmem:[#allocation3 + $0x18] sm:$0xff] %vm346_vm2, %v420_v34  ;;  %409 = vst.msk [vmem:[#allocation3 + $0x10] sm:$0xff] %vm346_vm2, %v408_v35  ;;  %668 = vmatprep.subr.mxu1 %v718_v0 }
 0x15f   : > { %669 = vmatpush3.msra.mxu1 %v459_v36  ;;  %v388_v37 = vpop.permute.xlu0 %387  ;;  %v390_v38 = vpop.permute.xlu1 %389 }
 0x160   : > { %v392_v39 = vsel %vm391_vm6, %v388_v37, %v390_v38  ;;  %670 = vmatprep.subr.mxu1 %v718_v0  ;;  %v458_v40 = vld [vmem:[#allocation3 + $0x30] sm:$0xff]  ;;  %v457_v41 = vld [vmem:[#allocation3 + $0x28] sm:$0xff] }
 0x161   : > { %394 = vst.msk [vmem:[#allocation3 + $0x8] sm:$0xff] %vm346_vm2, %v392_v39  ;;  %671 = vmatpush3.msra.mxu1 %v458_v40 }
 0x162   : > { %672 = vmatprep.subr.mxu1 %v718_v0 }
 0x163   : > { %673 = vmatpush3.msra.mxu1 %v457_v41  ;;  %v375_v42 = vpop.permute.xlu0 %374  ;;  %v377_v43 = vpop.permute.xlu1 %376 }
 0x164   : > { %v379_v44 = vsel %vm378_vm7, %v375_v42, %v377_v43  ;;  %674 = vmatprep.subr.mxu1 %v718_v0 }
 0x165   : > { %v381_v46 = vsel %vm813_vm4, %v379_v44, 0.0  ;;  %675 = vmatpush3.msra.mxu1 %v456_v45  ;;  %v455_v47 = vld [vmem:[#allocation3 + $0x18] sm:$0xff]  ;;  %v454_v48 = vld [vmem:[#allocation3 + $0x10] sm:$0xff] }
 0x166   : > { %382 = vst.msk [vmem:[#allocation3] sm:$0xff] %vm346_vm2, %v381_v46  ;;  %676 = vmatprep.subr.mxu1 %v718_v0 }
 0x167   : > { %677 = vmatpush3.msra.mxu1 %v455_v47 }
 0x168   : > { %678 = vmatprep.subr.mxu1 %v718_v0  ;;  %v453_v49 = vld [vmem:[#allocation3 + $0x8] sm:$0xff] }
 0x169   : > { %679 = vmatpush3.msra.mxu1 %v454_v48 }
 0x16a   : > { %680 = vmatprep.subr.mxu1 %v718_v0 }
 0x16b   : > { %681 = vmatpush3.msra.mxu1 %v453_v49 }
 0x16c   : > { %682 = vmatprep.subr.mxu1 %v718_v0 }
 0x16d   : > { %v452_v51 = vld [vmem:[#allocation3] sm:$0xff] }
 0x16e   : > { %683 = vmatpush3.msra.mxu1 %v452_v51 }
 0x16f   : > { %685 = vmatmul.mubr.msk.f32.vlgmr.msra.gmra.mxu1 %vm467_vm8, %v451_v50 }
 0x170   : > { %v465_v52 = vpop.permute.xlu0 %464 }
 0x22f   : > { %v537_v53 = vpop.f32.mrf.mxu1 }
 0x230   : > { %v538_v54 = vadd.f32 %v537_v53, %v465_v52 }
 0x231   : > { %v686_v55 = vpop.f32.mrf.mxu1 }
 0x232   : > { %541 = vst.msk [vmem:[%s260_s25] sm:$0xff] %vm346_vm2, %v538_v54 }
 0x233 PF: > { %s17_s21 = sadd.s32 1, %s716_s21  }
 0x234   : > { %p14_p4 = scmp.ge.s32.totalorder %s17_s21, 4  }
 0x236   :  { %16 = sbr.rel (!%p14_p4) target bundleno = 1 (0x1), region = 82 }

</bundles_post_ra>
